<compile_context>
chip_gen: v7x
topology: tpu7x:2x2x1
jax: 0.10.0
libtpu: 0.0.40
codegen_flags: <defaults>
</compile_context>

<pallas_src>
import functools

import jax
import jax.numpy as jnp
from jax.experimental import pallas as pl
from jax.experimental.pallas import tpu as pltpu


# ----------------------------------------------------------------------------
# Fused Pallas kernel: 3x3 conv (9 shifted matmuls) + instance norm + leaky relu
# ----------------------------------------------------------------------------
def _conv_in_lrelu_kernel(x_ref, w_ref, gb_ref, mask_ref, o_ref, *,
                          ksize, wp, inv_count, eps, neg_slope):
    # x_ref    : (B_blk, Cin, L_in)   bf16  zero-padded, width-stride-Wp flattened samples
    # w_ref    : (k*k, Cout, Cin)     bf16  per-tap weight matrices
    # gb_ref   : (Cout, 2)            f32   [:,0]=gamma, [:,1]=beta
    # mask_ref : (1, HWp)             f32   1.0 on valid output columns, 0.0 on wrap-around
    # o_ref    : (B_blk, Cout, HWp)   f32
    b_blk = x_ref.shape[0]
    cout = w_ref.shape[1]
    hwp = o_ref.shape[-1]

    mask = mask_ref[...]                       # (1, HWp), broadcasts over Cout
    gb = gb_ref[...]
    gamma = gb[:, 0:1]                         # (Cout, 1)
    beta = gb[:, 1:2]                          # (Cout, 1)

    for s in range(b_blk):                     # static unroll (B_blk is tiny)
        acc = jnp.zeros((cout, hwp), jnp.float32)
        # 3x3 conv = 9 shifted matmuls accumulated on the MXU in f32.
        for kh in range(ksize):
            for kw in range(ksize):
                t = kh * ksize + kw
                shift = kh * wp + kw
                xs = x_ref[s, :, shift:shift + hwp]          # (Cin, HWp) bf16
                acc = acc + jnp.dot(w_ref[t], xs,
                                    preferred_element_type=jnp.float32)

        # InstanceNorm2d: per-channel mean / biased variance over the *valid*
        # spatial positions (wrap-around columns masked out of the reductions).
        mean = jnp.sum(acc * mask, axis=-1, keepdims=True) * inv_count   # (Cout,1)
        xc = acc - mean
        var = jnp.sum((xc * xc) * mask, axis=-1, keepdims=True) * inv_count
        scale = jax.lax.rsqrt(var + eps) * gamma             # EUP rsqrt, folded with gamma
        yn = xc * scale + beta

        # LeakyReLU (default negative_slope = 0.01).
        o_ref[s] = jnp.where(yn > 0, yn, neg_slope * yn).astype(o_ref.dtype)


# ----------------------------------------------------------------------------
# Wrapper: padding / flattening (layout plumbing) + pallas_call
# ----------------------------------------------------------------------------
def conv_block_instance_norm(x, conv_w, conv_b, in_gamma, in_beta, *,
                             eps=1e-5, neg_slope=0.01):
    """Forward of ConvBlock_InstanceNorm: LeakyReLU(InstanceNorm(Conv3x3(x))).

    conv_b is accepted for API parity but intentionally unused: InstanceNorm's
    per-channel mean subtraction cancels the conv bias exactly.
    """
    del conv_b  # mathematically a no-op under instance norm
    N, Cin, H, W = x.shape
    Cout = conv_w.shape[0]
    k = 3                                      # module always uses 3x3, stride 1, pad 1

    Hp, Wp = H + 2, W + 2
    HWp = H * Wp                               # flattened (padded-width) output length
    # flat input must cover the largest tap shift (2*Wp + 2) past the last output
    L_in = ((HWp + (k - 1) * Wp + (k - 1) + 127) // 128) * 128

    # Align the contraction dim (Cin) to sublanes; extra channels are zeros.
    Cin_pad = ((Cin + 7) // 8) * 8
    if Cin_pad != Cin:
        x = jnp.pad(x, ((0, 0), (0, Cin_pad - Cin), (0, 0), (0, 0)))
        conv_w = jnp.pad(conv_w, ((0, 0), (0, Cin_pad - Cin), (0, 0), (0, 0)))

    # Zero-pad spatially (the conv's padding=1), flatten over (Hp, Wp), pad the
    # flat axis, and cast to bf16 for the MXU / halved HBM read.
    x_pad = jnp.pad(x, ((0, 0), (0, 0), (1, 1), (1, 1)))
    x_flat = x_pad.reshape(N, Cin_pad, Hp * Wp)
    x_flat = jnp.pad(x_flat, ((0, 0), (0, 0), (0, L_in - Hp * Wp)))
    x_flat = x_flat.astype(jnp.bfloat16)

    # Per-tap weight matrices: (k*k, Cout, Cin_pad), bf16.
    w_taps = conv_w.transpose(2, 3, 0, 1).reshape(k * k, Cout, Cin_pad)
    w_taps = w_taps.astype(jnp.bfloat16)

    # Packed per-channel affine params: one (Cout, 2) tile instead of 3 x (Cout, 1).
    gb = jnp.stack([in_gamma, in_beta], axis=1).astype(jnp.float32)

    # Valid-column mask for the flattened (padded-width) output row.
    col_in_row = jnp.arange(HWp, dtype=jnp.int32) % Wp
    mask = (col_in_row < W).astype(jnp.float32).reshape(1, HWp)

    # Batch blocking: >=2 parallel grid steps for v7x's two TensorCores, while
    # keeping the step count minimal for single-TC v5e/v6e.
    n_steps = 1 if N == 1 else 2
    B_blk = -(-N // n_steps)
    N_pad = n_steps * B_blk
    if N_pad != N:
        x_flat = jnp.pad(x_flat, ((0, N_pad - N), (0, 0), (0, 0)))

    kern = functools.partial(_conv_in_lrelu_kernel, ksize=k, wp=Wp,
                             inv_count=1.0 / (H * W), eps=eps,
                             neg_slope=neg_slope)

    out = pl.pallas_call(
        kern,
        out_shape=jax.ShapeDtypeStruct((N_pad, Cout, HWp), jnp.float32),
        grid=(n_steps,),
        in_specs=[
            pl.BlockSpec((B_blk, Cin_pad, L_in), lambda n: (n, 0, 0)),
            pl.BlockSpec((k * k, Cout, Cin_pad), lambda n: (0, 0, 0)),
            pl.BlockSpec((Cout, 2), lambda n: (0, 0)),
            pl.BlockSpec((1, HWp), lambda n: (0, 0)),
        ],
        out_specs=pl.BlockSpec((B_blk, Cout, HWp), lambda n: (n, 0, 0)),
        compiler_params=pltpu.CompilerParams(
            dimension_semantics=("parallel",)),   # v7x: one grid step per TensorCore
    )(x_flat, w_taps, gb, mask)

    # (N, Cout, H*Wp) -> (N, Cout, H, W): drop the wrap-around columns.
    out = out[:N].reshape(N, Cout, H, Wp)[:, :, :, :W]
    return out


# ----------------------------------------------------------------------------
# Pure-JAX reference (sanity check against the fused kernel)
# ----------------------------------------------------------------------------
def _reference_forward(x, conv_w, conv_b, in_gamma, in_beta, *,
                       eps=1e-5, neg_slope=0.01):
    y = jax.lax.conv_general_dilated(
        x, conv_w, window_strides=(1, 1), padding=((1, 1), (1, 1)),
        dimension_numbers=("NCHW", "OIHW", "NCHW"))
    y = y + conv_b.reshape(1, -1, 1, 1)
    mean = jnp.mean(y, axis=(2, 3), keepdims=True)
    var = jnp.mean((y - mean) ** 2, axis=(2, 3), keepdims=True)
    yn = (y - mean) * jax.lax.rsqrt(var + eps)
    yn = yn * in_gamma.reshape(1, -1, 1, 1) + in_beta.reshape(1, -1, 1, 1)
    return jnp.where(yn > 0, yn, neg_slope * yn)


# ----------------------------------------------------------------------------
# Main
# ----------------------------------------------------------------------------
if __name__ == "__main__":
    num_in_channels, num_out_channels = 4, 8
    N, H, W = 2, 16, 16

    key = jax.random.PRNGKey(0)
    kx, kw, kb, kg, kbeta = jax.random.split(key, 5)

    x = jax.random.normal(kx, (N, num_in_channels, H, W), dtype=jnp.float32)
    conv_w = 0.1 * jax.random.normal(
        kw, (num_out_channels, num_in_channels, 3, 3), jnp.float32)
    conv_b = 0.1 * jax.random.normal(kb, (num_out_channels,), jnp.float32)
    in_gamma = 1.0 + 0.1 * jax.random.normal(kg, (num_out_channels,), jnp.float32)
    in_beta = 0.1 * jax.random.normal(kbeta, (num_out_channels,), jnp.float32)

    fwd = jax.jit(conv_block_instance_norm)
    out = fwd(x, conv_w, conv_b, in_gamma, in_beta)
    jax.block_until_ready(out)

    assert out.shape == (N, num_out_channels, H, W), out.shape
    assert out.dtype == jnp.float32

    ref = _reference_forward(x, conv_w, conv_b, in_gamma, in_beta)
    max_err = float(jnp.max(jnp.abs(out - ref)))
    # Tolerance covers the bf16 matmul inputs (MXU-native path); norm math is f32.
    assert max_err < 3e-2, f"max abs error vs reference: {max_err}"

    print("KERNEL_OK")
</pallas_src>

<mosaic_0001>
module attributes {stable_mosaic.version = 11 : i64} {
  func.func @_conv_in_lrelu_kernel(%arg0: i32, %arg1: memref<1x8x384xbf16, #tpu.memory_space<vmem>>, %arg2: memref<9x8x8xbf16, #tpu.memory_space<vmem>>, %arg3: memref<8x2xf32, #tpu.memory_space<vmem>>, %arg4: memref<1x288xf32, #tpu.memory_space<vmem>>, %arg5: memref<1x8x288xf32, #tpu.memory_space<vmem>>) attributes {dimension_semantics = [#tpu.dimension_semantics<parallel>], iteration_bounds = array<i64: 2>, scalar_prefetch = 0 : i64, scratch_operands = 0 : i64, tpu.core_type = #tpu.core_type<tc>, window_params = [{transform_indices = @transform_0, window_bounds = array<i64: 1, 8, 384>}, {pipeline_mode = #tpu.pipeline_mode<synchronous>, transform_indices = @transform_1, window_bounds = array<i64: 9, 8, 8>}, {pipeline_mode = #tpu.pipeline_mode<synchronous>, transform_indices = @transform_2, window_bounds = array<i64: 8, 2>}, {pipeline_mode = #tpu.pipeline_mode<synchronous>, transform_indices = @transform_3, window_bounds = array<i64: 1, 288>}, {transform_indices = @transform_4, window_bounds = array<i64: 1, 8, 288>}]} {
    %c0 = arith.constant 0 : index
    %c0_0 = arith.constant 0 : index
    %0 = vector.load %arg4[%c0, %c0_0] : memref<1x288xf32, #tpu.memory_space<vmem>>, vector<1x288xf32>
    %c0_1 = arith.constant 0 : index
    %c0_2 = arith.constant 0 : index
    %1 = vector.load %arg3[%c0_1, %c0_2] : memref<8x2xf32, #tpu.memory_space<vmem>>, vector<8x2xf32>
    %2 = vector.extract_strided_slice %1 {offsets = [0, 0], sizes = [8, 1], strides = [1, 1]} : vector<8x2xf32> to vector<8x1xf32>
    %3 = vector.extract_strided_slice %1 {offsets = [0, 1], sizes = [8, 1], strides = [1, 1]} : vector<8x2xf32> to vector<8x1xf32>
    %cst = arith.constant 0.000000e+00 : f32
    %4 = vector.broadcast %cst : f32 to vector<8x288xf32>
    %c0_3 = arith.constant 0 : index
    %c0_4 = arith.constant 0 : index
    %c0_5 = arith.constant 0 : index
    %5 = vector.load %arg1[%c0_3, %c0_4, %c0_5] : memref<1x8x384xbf16, #tpu.memory_space<vmem>>, vector<1x8x288xbf16>
    %6 = vector.shape_cast %5 : vector<1x8x288xbf16> to vector<8x288xbf16>
    %c0_6 = arith.constant 0 : index
    %c0_7 = arith.constant 0 : index
    %c0_8 = arith.constant 0 : index
    %7 = vector.load %arg2[%c0_6, %c0_7, %c0_8] : memref<9x8x8xbf16, #tpu.memory_space<vmem>>, vector<1x8x8xbf16>
    %8 = vector.shape_cast %7 : vector<1x8x8xbf16> to vector<8x8xbf16>
    %cst_9 = arith.constant dense<0.000000e+00> : vector<8x288xf32>
    %9 = tpu.matmul %8, %6, %cst_9 {dimension_numbers = #tpu.dot_dimension_numbers<[1], [0], [0], [1], [0, 0, 1, 1], [], []>} : vector<8x8xbf16>, vector<8x288xbf16>, vector<8x288xf32> -> vector<8x288xf32>
    %10 = arith.addf %4, %9 : vector<8x288xf32>
    %c0_10 = arith.constant 0 : index
    %c0_11 = arith.constant 0 : index
    %c1 = arith.constant 1 : index
    %11 = vector.load %arg1[%c0_10, %c0_11, %c1] : memref<1x8x384xbf16, #tpu.memory_space<vmem>>, vector<1x8x288xbf16>
    %12 = vector.shape_cast %11 : vector<1x8x288xbf16> to vector<8x288xbf16>
    %c1_12 = arith.constant 1 : index
    %c0_13 = arith.constant 0 : index
    %c0_14 = arith.constant 0 : index
    %13 = vector.load %arg2[%c1_12, %c0_13, %c0_14] : memref<9x8x8xbf16, #tpu.memory_space<vmem>>, vector<1x8x8xbf16>
    %14 = vector.shape_cast %13 : vector<1x8x8xbf16> to vector<8x8xbf16>
    %cst_15 = arith.constant dense<0.000000e+00> : vector<8x288xf32>
    %15 = tpu.matmul %14, %12, %cst_15 {dimension_numbers = #tpu.dot_dimension_numbers<[1], [0], [0], [1], [0, 0, 1, 1], [], []>} : vector<8x8xbf16>, vector<8x288xbf16>, vector<8x288xf32> -> vector<8x288xf32>
    %16 = arith.addf %10, %15 : vector<8x288xf32>
    %c0_16 = arith.constant 0 : index
    %c0_17 = arith.constant 0 : index
    %c2 = arith.constant 2 : index
    %17 = vector.load %arg1[%c0_16, %c0_17, %c2] : memref<1x8x384xbf16, #tpu.memory_space<vmem>>, vector<1x8x288xbf16>
    %18 = vector.shape_cast %17 : vector<1x8x288xbf16> to vector<8x288xbf16>
    %c2_18 = arith.constant 2 : index
    %c0_19 = arith.constant 0 : index
    %c0_20 = arith.constant 0 : index
    %19 = vector.load %arg2[%c2_18, %c0_19, %c0_20] : memref<9x8x8xbf16, #tpu.memory_space<vmem>>, vector<1x8x8xbf16>
    %20 = vector.shape_cast %19 : vector<1x8x8xbf16> to vector<8x8xbf16>
    %cst_21 = arith.constant dense<0.000000e+00> : vector<8x288xf32>
    %21 = tpu.matmul %20, %18, %cst_21 {dimension_numbers = #tpu.dot_dimension_numbers<[1], [0], [0], [1], [0, 0, 1, 1], [], []>} : vector<8x8xbf16>, vector<8x288xbf16>, vector<8x288xf32> -> vector<8x288xf32>
    %22 = arith.addf %16, %21 : vector<8x288xf32>
    %c0_22 = arith.constant 0 : index
    %c0_23 = arith.constant 0 : index
    %c18 = arith.constant 18 : index
    %23 = vector.load %arg1[%c0_22, %c0_23, %c18] : memref<1x8x384xbf16, #tpu.memory_space<vmem>>, vector<1x8x288xbf16>
    %24 = vector.shape_cast %23 : vector<1x8x288xbf16> to vector<8x288xbf16>
    %c3 = arith.constant 3 : index
    %c0_24 = arith.constant 0 : index
    %c0_25 = arith.constant 0 : index
    %25 = vector.load %arg2[%c3, %c0_24, %c0_25] : memref<9x8x8xbf16, #tpu.memory_space<vmem>>, vector<1x8x8xbf16>
    %26 = vector.shape_cast %25 : vector<1x8x8xbf16> to vector<8x8xbf16>
    %cst_26 = arith.constant dense<0.000000e+00> : vector<8x288xf32>
    %27 = tpu.matmul %26, %24, %cst_26 {dimension_numbers = #tpu.dot_dimension_numbers<[1], [0], [0], [1], [0, 0, 1, 1], [], []>} : vector<8x8xbf16>, vector<8x288xbf16>, vector<8x288xf32> -> vector<8x288xf32>
    %28 = arith.addf %22, %27 : vector<8x288xf32>
    %c0_27 = arith.constant 0 : index
    %c0_28 = arith.constant 0 : index
    %c19 = arith.constant 19 : index
    %29 = vector.load %arg1[%c0_27, %c0_28, %c19] : memref<1x8x384xbf16, #tpu.memory_space<vmem>>, vector<1x8x288xbf16>
    %30 = vector.shape_cast %29 : vector<1x8x288xbf16> to vector<8x288xbf16>
    %c4 = arith.constant 4 : index
    %c0_29 = arith.constant 0 : index
    %c0_30 = arith.constant 0 : index
    %31 = vector.load %arg2[%c4, %c0_29, %c0_30] : memref<9x8x8xbf16, #tpu.memory_space<vmem>>, vector<1x8x8xbf16>
    %32 = vector.shape_cast %31 : vector<1x8x8xbf16> to vector<8x8xbf16>
    %cst_31 = arith.constant dense<0.000000e+00> : vector<8x288xf32>
    %33 = tpu.matmul %32, %30, %cst_31 {dimension_numbers = #tpu.dot_dimension_numbers<[1], [0], [0], [1], [0, 0, 1, 1], [], []>} : vector<8x8xbf16>, vector<8x288xbf16>, vector<8x288xf32> -> vector<8x288xf32>
    %34 = arith.addf %28, %33 : vector<8x288xf32>
    %c0_32 = arith.constant 0 : index
    %c0_33 = arith.constant 0 : index
    %c20 = arith.constant 20 : index
    %35 = vector.load %arg1[%c0_32, %c0_33, %c20] : memref<1x8x384xbf16, #tpu.memory_space<vmem>>, vector<1x8x288xbf16>
    %36 = vector.shape_cast %35 : vector<1x8x288xbf16> to vector<8x288xbf16>
    %c5 = arith.constant 5 : index
    %c0_34 = arith.constant 0 : index
    %c0_35 = arith.constant 0 : index
    %37 = vector.load %arg2[%c5, %c0_34, %c0_35] : memref<9x8x8xbf16, #tpu.memory_space<vmem>>, vector<1x8x8xbf16>
    %38 = vector.shape_cast %37 : vector<1x8x8xbf16> to vector<8x8xbf16>
    %cst_36 = arith.constant dense<0.000000e+00> : vector<8x288xf32>
    %39 = tpu.matmul %38, %36, %cst_36 {dimension_numbers = #tpu.dot_dimension_numbers<[1], [0], [0], [1], [0, 0, 1, 1], [], []>} : vector<8x8xbf16>, vector<8x288xbf16>, vector<8x288xf32> -> vector<8x288xf32>
    %40 = arith.addf %34, %39 : vector<8x288xf32>
    %c0_37 = arith.constant 0 : index
    %c0_38 = arith.constant 0 : index
    %c36 = arith.constant 36 : index
    %41 = vector.load %arg1[%c0_37, %c0_38, %c36] : memref<1x8x384xbf16, #tpu.memory_space<vmem>>, vector<1x8x288xbf16>
    %42 = vector.shape_cast %41 : vector<1x8x288xbf16> to vector<8x288xbf16>
    %c6 = arith.constant 6 : index
    %c0_39 = arith.constant 0 : index
    %c0_40 = arith.constant 0 : index
    %43 = vector.load %arg2[%c6, %c0_39, %c0_40] : memref<9x8x8xbf16, #tpu.memory_space<vmem>>, vector<1x8x8xbf16>
    %44 = vector.shape_cast %43 : vector<1x8x8xbf16> to vector<8x8xbf16>
    %cst_41 = arith.constant dense<0.000000e+00> : vector<8x288xf32>
    %45 = tpu.matmul %44, %42, %cst_41 {dimension_numbers = #tpu.dot_dimension_numbers<[1], [0], [0], [1], [0, 0, 1, 1], [], []>} : vector<8x8xbf16>, vector<8x288xbf16>, vector<8x288xf32> -> vector<8x288xf32>
    %46 = arith.addf %40, %45 : vector<8x288xf32>
    %c0_42 = arith.constant 0 : index
    %c0_43 = arith.constant 0 : index
    %c37 = arith.constant 37 : index
    %47 = vector.load %arg1[%c0_42, %c0_43, %c37] : memref<1x8x384xbf16, #tpu.memory_space<vmem>>, vector<1x8x288xbf16>
    %48 = vector.shape_cast %47 : vector<1x8x288xbf16> to vector<8x288xbf16>
    %c7 = arith.constant 7 : index
    %c0_44 = arith.constant 0 : index
    %c0_45 = arith.constant 0 : index
    %49 = vector.load %arg2[%c7, %c0_44, %c0_45] : memref<9x8x8xbf16, #tpu.memory_space<vmem>>, vector<1x8x8xbf16>
    %50 = vector.shape_cast %49 : vector<1x8x8xbf16> to vector<8x8xbf16>
    %cst_46 = arith.constant dense<0.000000e+00> : vector<8x288xf32>
    %51 = tpu.matmul %50, %48, %cst_46 {dimension_numbers = #tpu.dot_dimension_numbers<[1], [0], [0], [1], [0, 0, 1, 1], [], []>} : vector<8x8xbf16>, vector<8x288xbf16>, vector<8x288xf32> -> vector<8x288xf32>
    %52 = arith.addf %46, %51 : vector<8x288xf32>
    %c0_47 = arith.constant 0 : index
    %c0_48 = arith.constant 0 : index
    %c38 = arith.constant 38 : index
    %53 = vector.load %arg1[%c0_47, %c0_48, %c38] : memref<1x8x384xbf16, #tpu.memory_space<vmem>>, vector<1x8x288xbf16>
    %54 = vector.shape_cast %53 : vector<1x8x288xbf16> to vector<8x288xbf16>
    %c8 = arith.constant 8 : index
    %c0_49 = arith.constant 0 : index
    %c0_50 = arith.constant 0 : index
    %55 = vector.load %arg2[%c8, %c0_49, %c0_50] : memref<9x8x8xbf16, #tpu.memory_space<vmem>>, vector<1x8x8xbf16>
    %56 = vector.shape_cast %55 : vector<1x8x8xbf16> to vector<8x8xbf16>
    %cst_51 = arith.constant dense<0.000000e+00> : vector<8x288xf32>
    %57 = tpu.matmul %56, %54, %cst_51 {dimension_numbers = #tpu.dot_dimension_numbers<[1], [0], [0], [1], [0, 0, 1, 1], [], []>} : vector<8x8xbf16>, vector<8x288xbf16>, vector<8x288xf32> -> vector<8x288xf32>
    %58 = arith.addf %52, %57 : vector<8x288xf32>
    %59 = vector.broadcast %0 : vector<1x288xf32> to vector<8x288xf32>
    %60 = arith.mulf %58, %59 : vector<8x288xf32>
    %cst_52 = arith.constant dense<0.000000e+00> : vector<8xf32>
    %61 = vector.multi_reduction <add>, %60, %cst_52 [1] : vector<8x288xf32> to vector<8xf32>
    %62 = vector.shape_cast %61 : vector<8xf32> to vector<8x1xf32>
    %cst_53 = arith.constant 3.906250e-03 : f32
    %63 = vector.broadcast %cst_53 : f32 to vector<8x1xf32>
    %64 = arith.mulf %62, %63 : vector<8x1xf32>
    %65 = vector.broadcast %64 : vector<8x1xf32> to vector<8x288xf32>
    %66 = arith.subf %58, %65 : vector<8x288xf32>
    %67 = arith.mulf %66, %66 : vector<8x288xf32>
    %68 = vector.broadcast %0 : vector<1x288xf32> to vector<8x288xf32>
    %69 = arith.mulf %67, %68 : vector<8x288xf32>
    %cst_54 = arith.constant dense<0.000000e+00> : vector<8xf32>
    %70 = vector.multi_reduction <add>, %69, %cst_54 [1] : vector<8x288xf32> to vector<8xf32>
    %71 = vector.shape_cast %70 : vector<8xf32> to vector<8x1xf32>
    %cst_55 = arith.constant 3.906250e-03 : f32
    %72 = vector.broadcast %cst_55 : f32 to vector<8x1xf32>
    %73 = arith.mulf %71, %72 : vector<8x1xf32>
    %cst_56 = arith.constant 9.99999974E-6 : f32
    %74 = vector.broadcast %cst_56 : f32 to vector<8x1xf32>
    %75 = arith.addf %73, %74 : vector<8x1xf32>
    %76 = math.rsqrt %75 : vector<8x1xf32>
    %77 = arith.mulf %76, %2 : vector<8x1xf32>
    %78 = vector.broadcast %77 : vector<8x1xf32> to vector<8x288xf32>
    %79 = arith.mulf %66, %78 : vector<8x288xf32>
    %80 = vector.broadcast %3 : vector<8x1xf32> to vector<8x288xf32>
    %81 = arith.addf %79, %80 : vector<8x288xf32>
    %cst_57 = arith.constant 0.000000e+00 : f32
    %82 = vector.broadcast %cst_57 : f32 to vector<8x288xf32>
    %83 = arith.cmpf ogt, %81, %82 : vector<8x288xf32>
    %cst_58 = arith.constant 0.00999999977 : f32
    %84 = vector.broadcast %cst_58 : f32 to vector<8x288xf32>
    %85 = arith.mulf %84, %81 : vector<8x288xf32>
    %86 = arith.select %83, %81, %85 : vector<8x288xi1>, vector<8x288xf32>
    %c0_59 = arith.constant 0 : index
    %c0_60 = arith.constant 0 : index
    %c0_61 = arith.constant 0 : index
    %87 = vector.load %arg5[%c0_59, %c0_60, %c0_61] : memref<1x8x288xf32, #tpu.memory_space<vmem>>, vector<1x8x288xf32>
    %88 = vector.shape_cast %87 : vector<1x8x288xf32> to vector<8x288xf32>
    %89 = vector.shape_cast %86 : vector<8x288xf32> to vector<1x8x288xf32>
    tpu.vector_store %arg5[%c0_59, %c0_60, %c0_61], %89 {strides = array<i32>} : memref<1x8x288xf32, #tpu.memory_space<vmem>>, vector<1x8x288xf32>,
    return
  }
  func.func @transform_0(%arg0: i32) -> (i32, i32, i32) {
    %c0_i32 = arith.constant 0 : i32
    %c0_i32_0 = arith.constant 0 : i32
    %c0_i32_1 = arith.constant 0 : i32
    return %arg0, %c0_i32, %c0_i32_0 : i32, i32, i32
  }
  func.func @transform_1(%arg0: i32) -> (i32, i32, i32) {
    %c0_i32 = arith.constant 0 : i32
    %c0_i32_0 = arith.constant 0 : i32
    %c0_i32_1 = arith.constant 0 : i32
    %c0_i32_2 = arith.constant 0 : i32
    return %c0_i32, %c0_i32_0, %c0_i32_1 : i32, i32, i32
  }
  func.func @transform_2(%arg0: i32) -> (i32, i32) {
    %c0_i32 = arith.constant 0 : i32
    %c0_i32_0 = arith.constant 0 : i32
    %c0_i32_1 = arith.constant 0 : i32
    return %c0_i32, %c0_i32_0 : i32, i32
  }
  func.func @transform_3(%arg0: i32) -> (i32, i32) {
    %c0_i32 = arith.constant 0 : i32
    %c0_i32_0 = arith.constant 0 : i32
    %c0_i32_1 = arith.constant 0 : i32
    return %c0_i32, %c0_i32_0 : i32, i32
  }
  func.func @transform_4(%arg0: i32) -> (i32, i32, i32) {
    %c0_i32 = arith.constant 0 : i32
    %c0_i32_0 = arith.constant 0 : i32
    %c0_i32_1 = arith.constant 0 : i32
    return %arg0, %c0_i32, %c0_i32_0 : i32, i32, i32
  }
}

</mosaic_0001>

<bundles_post_ra>
// kernel: conv_block_instance_norm.1
= control target key start
LH: loop header
LB: loop body
LE: loop exit
PB: predicated region body
PF: predicated region fallthrough
CT: control target
= control target key end

     0   :  { %s1545_s15 = smov 0   ;;  %s1686_s0 = inlined_call_operand.vmem [shape: bf16[2,8,384], index: 0, kind: input, shape index: {}]   ;;  %s1687_s1 = inlined_call_operand.vmem [shape: bf16[9,8,8], index: 1, kind: input, shape index: {}]   ;;  %s1688_s2 = inlined_call_operand.vmem [shape: f32[8,2], index: 2, kind: input, shape index: {}]   ;;  %s1689_s3 = inlined_call_operand.vmem [shape: f32[1,288], index: 3, kind: input, shape index: {}]   ;;  %s1690_s4 = inlined_call_operand.vmem [shape: f32[2,8,288], index: 4, kind: output, shape index: {}]  }
   0x1 LB: > { %s1287_s16 = sadd.s32 4294967295, %s1506_s15   ;;  %p1291_p0 = scmp.ge.s32.totalorder %s1506_s15, 1  ;;  %s1506_s15 = sphi %s1545_s15, %s14_s15  }
   0x2   : > { %p162_p1 = scmp.lt.s32.totalorder %s1506_s15, 3 }
   0x4   : > { %p163_p2 = pnand %p1291_p0, %p162_p1 }
   0x5   : > { %p188_p3 = scmp.lt.s32.totalorder (!%p163_p2), %s1287_s16, 1  ;;  %v1508_v0 = vmov (!%p163_p2), 0.0   ;;  %vm1509_vm0 = vmmov (!%p163_p2), 0   ;;  %v1510_v1 = vmov (!%p163_p2), 0   ;;  %s1511_s21 = smov (!%p163_p2), 127   ;;  %vm227_vm1 = vcmask (!%p163_p2), 1043456  }
   0x6   : > { %166 = sbr.rel (%p163_p2) target bundleno = 909 (0x38d), region = 36  ;;  %1352 = vmatprep.subr.bf16.mxu1 (!%p163_p2), %v1508_v0  ;;  %1354 = vmatprep.mubr.msk.bf16.mxu1 (!%p163_p2), %vm1509_vm0, %v1508_v0  ;;  %s1512_s22 = smov (!%p163_p2), 126   ;;  %v1294_v9 = vld [vmem:[%s1687_s1 + $0x4] sm:$0xf] (!%p163_p2)  ;;  %vm223_vm2 = vcmask (!%p163_p2), 64512   ;;  %vm220_vm3 = vcmask (!%p163_p2), 1039360  }
   0x7   : > { %269 = vmatprep.mubr.bf16.mxu0 (!%p163_p2), %v1510_v1  ;;  %1492 = vset.pattern.permute.xlu0 (!%p163_p2), %v1510_v1  ;;  %s1513_s23 = smov (!%p163_p2), 110   ;;  %s1514_s24 = smov (!%p163_p2), 109   ;;  %vm419_vm4 = vcmask (!%p163_p2), 1031168   ;;  %v203_v21 = vld [vmem:[%s1687_s1] sm:$0xf] (!%p163_p2)  ;;  %vm526_vm5 = vcmask (!%p163_p2), 900096  }
   0x8   : > { %s1515_s25 = smov (!%p163_p2), 108   ;;  %s1516_s26 = smov (!%p163_p2), 92   ;;  %v1304_v29 = vld [vmem:[%s1687_s1 + $0x8] sm:$0xf] (!%p163_p2)  ;;  %vm633_vm6 = vcmask (!%p163_p2), 891904   ;;  %vm740_vm7 = vcmask (!%p163_p2), 883712  }
   0x9   : > { %s1517_s27 = smov (!%p163_p2), 91   ;;  %s1518_s28 = smov (!%p163_p2), 90   ;;  %v1308_v37 = vld [vmem:[%s1687_s1 + $0xc] sm:$0xf] (!%p163_p2)  ;;  %v1312_v45 = vld [vmem:[%s1687_s1 + $0x10] sm:$0xf] (!%p163_p2) }
   0xa   : > { %vm847_vm8 = vcmask (!%p163_p2), 752640   ;;  %v1316_v53 = vld [vmem:[%s1687_s1 + $0x14] sm:$0xf] (!%p163_p2)  ;;  %vm954_vm9 = vcmask (!%p163_p2), 744448   ;;  %v1320_v61 = vld [vmem:[%s1687_s1 + $0x18] sm:$0xf] (!%p163_p2) }
   0xb   : > { %vm1061_vm10 = vcmask (!%p163_p2), 736256   ;;  %vm1180_vm11 = vcmask (!%p163_p2), 261120  }
   0xd   : > { %s1692_s16 = smov (!%p188_p3, %s1287_s16), 1 }
   0xe   : > { %s1470_s17 = smul.u32 12, %s1692_s16 }
  0x10   : > { %s192_s20 = scalar_lea.vmem %s1686_s0, %s1470_s17 }
  0x11   : > { %v1495_v2 = vld [vmem:[%s192_s20 + $0x8] ss:$0 sps:$4 sm:$0xff]   ;;  %v201_v3 = vld [vmem:[%s192_s20] sm:$0xff] }
  0x12   : > { %v1295_v4 = vcombine.low %v201_v3, %v201_v3  ;;  %218 = vrot.lane.b32.xlu1 %v1495_v2, %s1511_s21  ;;  %v1296_v5 = vcombine.high %v201_v3, %v201_v3  ;;  %v328_v10 = vsel %vm227_vm1, %v1495_v2, 0 }
  0x14   : > { %214 = vrot.lane.b32.xlu0 %v1295_v4, %s1511_s21  ;;  %v322_v17 = vsel %vm227_vm1, %v1295_v4, 0 }
  0x16   : > { %413 = vrot.lane.b32.xlu1 %v1295_v4, %s1512_s22 }
  0x18   : > { %216 = vrot.lane.b32.xlu0 %v1296_v5, %s1511_s21 }
  0x1a   : > { %417 = vrot.lane.b32.xlu1 %v1495_v2, %s1512_s22 }
  0x1c   : > { %415 = vrot.lane.b32.xlu0 %v1296_v5, %s1512_s22 }
  0x1e   : > { %522 = vrot.lane.b32.xlu1 %v1296_v5, %s1513_s23 }
  0x20   : > { %520 = vrot.lane.b32.xlu0 %v1295_v4, %s1513_s23 }
  0x22   : > { %627 = vrot.lane.b32.xlu1 %v1295_v4, %s1514_s24 }
  0x24   : > { %524 = vrot.lane.b32.xlu0 %v1495_v2, %s1513_s23 }
  0x26   : > { %631 = vrot.lane.b32.xlu1 %v1495_v2, %s1514_s24 }
  0x28   : > { %629 = vrot.lane.b32.xlu0 %v1296_v5, %s1514_s24 }
  0x2a   : > { %736 = vrot.lane.b32.xlu1 %v1296_v5, %s1515_s25 }
  0x2c   : > { %734 = vrot.lane.b32.xlu0 %v1295_v4, %s1515_s25 }
  0x2e   : > { %841 = vrot.lane.b32.xlu1 %v1295_v4, %s1516_s26 }
  0x30   : > { %738 = vrot.lane.b32.xlu0 %v1495_v2, %s1515_s25 }
  0x32   : > { %845 = vrot.lane.b32.xlu1 %v1495_v2, %s1516_s26 }
  0x34   : > { %843 = vrot.lane.b32.xlu0 %v1296_v5, %s1516_s26 }
  0x36   : > { %950 = vrot.lane.b32.xlu1 %v1296_v5, %s1517_s27 }
  0x38   : > { %948 = vrot.lane.b32.xlu0 %v1295_v4, %s1517_s27 }
  0x3a   : > { %1055 = vrot.lane.b32.xlu1 %v1295_v4, %s1518_s28 }
  0x3c   : > { %952 = vrot.lane.b32.xlu0 %v1495_v2, %s1517_s27  ;;  %s1471_s27 = smul.u32 24, %s1692_s16 }
  0x3e   : > { %1059 = vrot.lane.b32.xlu1 %v1495_v2, %s1518_s28  ;;  %s197_s30 = scalar_lea.vmem %s1690_s4, %s1471_s27 }
  0x40   : > { %1057 = vrot.lane.b32.xlu0 %v1296_v5, %s1518_s28 }
  0x84   : > { %v219_v6 = vpop.permute.xlu1 %218 }
  0x85   : > { %v235_v8 = vsel %vm227_vm1, %v219_v6, 0 }
  0x86   : > { %v215_v7 = vpop.permute.xlu0 %214  ;;  %1353 = vmatpush3.bf16.msra.mxu1 %v235_v8 }
  0x87   : > { %1358 = vmatprep.subr.bf16.mxu1 %v1508_v0 }
  0x88   : > { %v414_v11 = vpop.permute.xlu1 %413 }
  0x89   : > { %1355 = vmatmul.mubr.msk.bf16.vlgmr.msra.gmra.mrb[0].mxu1 %vm223_vm2, %v1294_v9 }
  0x8a   : > { %v217_v12 = vpop.permute.xlu0 %216  ;;  %1359 = vmatpush3.bf16.msra.mxu1 %v328_v10  ;;  %1360 = vmatprep.mubr.msk.bf16.mxu1 %vm1509_vm0, %v1508_v0  ;;  %v1328_v10 = vld [vmem:[%s1687_s1 + $0x20] sm:$0xf] }
  0x8b   : > { %v222_v13 = vsel %vm220_vm3, %v217_v12, %v219_v6  ;;  %v221_v14 = vsel %vm220_vm3, %v215_v7, %v217_v12  ;;  %1364 = vmatprep.subr.bf16.mxu1 %v1508_v0  ;;  %v1324_v6 = vld [vmem:[%s1687_s1 + $0x1c] sm:$0xf] }
  0x8c   : > { %1298 = vmatprep.subr.msk.bf16.mxu0 %vm227_vm1, %v222_v13  ;;  %v229_v15 = vsel %vm227_vm1, %v221_v14, 0  ;;  %v418_v16 = vpop.permute.xlu1 %417 }
  0x8d   : > { %238 = vmatpush1.bf16.msra.mxu0 %v229_v15  ;;  %v432_v22 = vsel %vm227_vm1, %v418_v16, 0 }
  0x8e   : > { %1301 = vmatprep.subr.msk.bf16.mxu0 %vm227_vm1, %v1296_v5  ;;  %v416_v18 = vpop.permute.xlu0 %415 }
  0x8f   : > { %v421_v19 = vsel %vm419_vm4, %v416_v18, %v418_v16  ;;  %v420_v23 = vsel %vm419_vm4, %v414_v11, %v416_v18  ;;  %v1161_v11 = vlaneseq }
  0x90   : > { %1299 = vmatmul.mubr.msk.bf16.vlgmr.msra.gmra.mrb[0].mxu0 %vm223_vm2, %v1294_v9  ;;  %v523_v24 = vpop.permute.xlu1 %522  ;;  %v426_v26 = vsel %vm227_vm1, %v420_v23, 0 }
  0x91   : > { %331 = vmatpush1.bf16.msra.mxu0 %v322_v17  ;;  %362 = vmatprep.mubr.bf16.mxu0 %v1510_v1  ;;  %v1162_v12 = vshrl.u32 %v1161_v11, 7 }
  0x92   : > { %1305 = vmatprep.subr.msk.bf16.mxu0 %vm227_vm1, %v421_v19  ;;  %v521_v20 = vpop.permute.xlu0 %520 }
  0x93   : > { %v527_v31 = vsel %vm526_vm5, %v521_v20, %v523_v24  ;;  %v1171_v13 = vsub.s32 2, %v1162_v12  ;;  %v1163_v14 = vsub.s32 0, %v1162_v12  ;;  %v1167_v16 = vsub.s32 1, %v1162_v12 }
  0x94   : > { %v628_v28 = vpop.permute.xlu1 %627  ;;  %v533_v34 = vsel %vm227_vm1, %v527_v31, 0 }
  0x95   : > { %1361 = vmatmul.mubr.msk.bf16.vlgmr.msra.gmra.mrb[0].mxu1 %vm223_vm2, %v203_v21 }
  0x96   : > { %1365 = vmatpush3.bf16.msra.mxu1 %v432_v22  ;;  %1366 = vmatprep.mubr.msk.bf16.mxu1 %vm1509_vm0, %v1508_v0  ;;  %v525_v25 = vpop.permute.xlu0 %524 }
  0x97   : > { %1370 = vmatprep.subr.bf16.mxu1 %v1508_v0  ;;  %v528_v27 = vsel %vm526_vm5, %v523_v24, %v525_v25  ;;  %v539_v30 = vsel %vm227_vm1, %v525_v25, 0 }
  0x98   : > { %v632_v33 = vpop.permute.xlu1 %631 }
  0x99   : > { %v646_v38 = vsel %vm227_vm1, %v632_v33, 0 }
  0x9a   : > { %v630_v32 = vpop.permute.xlu0 %629 }
  0x9b   : > { %v635_v35 = vsel %vm633_vm6, %v630_v32, %v632_v33  ;;  %v634_v39 = vsel %vm633_vm6, %v628_v28, %v630_v32 }
  0x9c   : > { %1302 = vmatmul.mubr.msk.bf16.vlgmr.msra.gmra.mrb[0].mxu0 %vm223_vm2, %v203_v21  ;;  %v737_v40 = vpop.permute.xlu1 %736  ;;  %v640_v42 = vsel %vm227_vm1, %v634_v39, 0 }
  0x9d   : > { %435 = vmatpush1.bf16.msra.mxu0 %v426_v26  ;;  %466 = vmatprep.mubr.bf16.mxu0 %v1510_v1 }
  0x9e   : > { %1309 = vmatprep.subr.msk.bf16.mxu0 %vm227_vm1, %v528_v27  ;;  %v735_v36 = vpop.permute.xlu0 %734 }
  0x9f   : > { %v741_v47 = vsel %vm740_vm7, %v735_v36, %v737_v40 }
  0xa0   : > { %v842_v44 = vpop.permute.xlu1 %841  ;;  %v747_v50 = vsel %vm227_vm1, %v741_v47, 0  ;;  %v1519_v47 = vmov 1  }
  0xa1   : > { %1367 = vmatmul.mubr.msk.bf16.vlgmr.msra.gmra.mrb[0].mxu1 %vm223_vm2, %v1304_v29  ;;  %1493 = vset.pattern.permute.xlu1 %v1519_v47 }
  0xa2   : > { %1371 = vmatpush3.bf16.msra.mxu1 %v539_v30  ;;  %1372 = vmatprep.mubr.msk.bf16.mxu1 %vm1509_vm0, %v1508_v0  ;;  %v739_v41 = vpop.permute.xlu0 %738 }
  0xa3   : > { %1376 = vmatprep.subr.bf16.mxu1 %v1508_v0  ;;  %v742_v43 = vsel %vm740_vm7, %v737_v40, %v739_v41  ;;  %v753_v46 = vsel %vm227_vm1, %v739_v41, 0 }
  0xa4   : > { %v846_v49 = vpop.permute.xlu1 %845 }
  0xa5   : > { %v860_v54 = vsel %vm227_vm1, %v846_v49, 0 }
  0xa6   : > { %v844_v48 = vpop.permute.xlu0 %843 }
  0xa7   : > { %v849_v51 = vsel %vm847_vm8, %v844_v48, %v846_v49  ;;  %v848_v55 = vsel %vm847_vm8, %v842_v44, %v844_v48 }
  0xa8   : > { %1306 = vmatmul.mubr.msk.bf16.vlgmr.msra.gmra.mrb[0].mxu0 %vm223_vm2, %v1304_v29  ;;  %v951_v56 = vpop.permute.xlu1 %950  ;;  %v854_v58 = vsel %vm227_vm1, %v848_v55, 0 }
  0xa9   : > { %542 = vmatpush1.bf16.msra.mxu0 %v533_v34  ;;  %573 = vmatprep.mubr.bf16.mxu0 %v1510_v1 }
  0xaa   : > { %1313 = vmatprep.subr.msk.bf16.mxu0 %vm227_vm1, %v635_v35  ;;  %v949_v52 = vpop.permute.xlu0 %948 }
  0xab   : > { %v955_v63 = vsel %vm954_vm9, %v949_v52, %v951_v56 }
  0xac   : > { %v1056_v60 = vpop.permute.xlu1 %1055  ;;  %v961_v4 = vsel %vm227_vm1, %v955_v63, 0 }
  0xad   : > { %1373 = vmatmul.mubr.msk.bf16.vlgmr.msra.gmra.mrb[0].mxu1 %vm223_vm2, %v1308_v37 }
  0xae   : > { %1377 = vmatpush3.bf16.msra.mxu1 %v646_v38  ;;  %1378 = vmatprep.mubr.msk.bf16.mxu1 %vm1509_vm0, %v1508_v0  ;;  %v953_v57 = vpop.permute.xlu0 %952 }
  0xaf   : > { %1382 = vmatprep.subr.bf16.mxu1 %v1508_v0  ;;  %v956_v59 = vsel %vm954_vm9, %v951_v56, %v953_v57  ;;  %v967_v62 = vsel %vm227_vm1, %v953_v57, 0 }
  0xb0   : > { %v1060_v3 = vpop.permute.xlu1 %1059 }
  0xb1   : > { %v1074_v7 = vsel %vm227_vm1, %v1060_v3, 0 }
  0xb2   : > { %v1058_v2 = vpop.permute.xlu0 %1057 }
  0xb3   : > { %v1063_v5 = vsel %vm1061_vm10, %v1058_v2, %v1060_v3  ;;  %v1062_v8 = vsel %vm1061_vm10, %v1056_v60, %v1058_v2 }
  0xb4   : > { %1310 = vmatmul.mubr.msk.bf16.vlgmr.msra.gmra.mrb[0].mxu0 %vm223_vm2, %v1308_v37  ;;  %v1068_v9 = vsel %vm227_vm1, %v1062_v8, 0 }
  0xb5   : > { %649 = vmatpush1.bf16.msra.mxu0 %v640_v42  ;;  %680 = vmatprep.mubr.bf16.mxu0 %v1510_v1 }
  0xb6   : > { %1317 = vmatprep.subr.msk.bf16.mxu0 %vm227_vm1, %v742_v43 }
  0xb9   : > { %1379 = vmatmul.mubr.msk.bf16.vlgmr.msra.gmra.mrb[0].mxu1 %vm223_vm2, %v1312_v45 }
  0xba   : > { %1383 = vmatpush3.bf16.msra.mxu1 %v753_v46  ;;  %1384 = vmatprep.mubr.msk.bf16.mxu1 %vm1509_vm0, %v1508_v0  ;;  %v200_v46 = vld [vmem:[%s1688_s2] sm:$0xff] }
  0xbb   : > { %1388 = vmatprep.subr.bf16.mxu1 %v1508_v0 }
  0xc0   : > { %1314 = vmatmul.mubr.msk.bf16.vlgmr.msra.gmra.mrb[0].mxu0 %vm223_vm2, %v1312_v45 }
  0xc1   : > { %756 = vmatpush1.bf16.msra.mxu0 %v747_v50  ;;  %787 = vmatprep.mubr.bf16.mxu0 %v1510_v1 }
  0xc2   : > { %1321 = vmatprep.subr.msk.bf16.mxu0 %vm227_vm1, %v849_v51 }
  0xc5   : > { %1385 = vmatmul.mubr.msk.bf16.vlgmr.msra.gmra.mrb[0].mxu1 %vm223_vm2, %v1316_v53 }
  0xc6   : > { %1389 = vmatpush3.bf16.msra.mxu1 %v860_v54  ;;  %1390 = vmatprep.mubr.msk.bf16.mxu1 %vm1509_vm0, %v1508_v0 }
  0xc7   : > { %1394 = vmatprep.subr.bf16.mxu1 %v1508_v0 }
  0xcc   : > { %1318 = vmatmul.mubr.msk.bf16.vlgmr.msra.gmra.mrb[0].mxu0 %vm223_vm2, %v1316_v53 }
  0xcd   : > { %863 = vmatpush1.bf16.msra.mxu0 %v854_v58  ;;  %894 = vmatprep.mubr.bf16.mxu0 %v1510_v1 }
  0xce   : > { %1325 = vmatprep.subr.msk.bf16.mxu0 %vm227_vm1, %v956_v59 }
  0xd1   : > { %1391 = vmatmul.mubr.msk.bf16.vlgmr.msra.gmra.mrb[0].mxu1 %vm223_vm2, %v1320_v61 }
  0xd2   : > { %1395 = vmatpush3.bf16.msra.mxu1 %v967_v62  ;;  %1396 = vmatprep.mubr.msk.bf16.mxu1 %vm1509_vm0, %v1508_v0 }
  0xd3   : > { %1400 = vmatprep.subr.bf16.mxu1 %v1508_v0 }
  0xd8   : > { %1322 = vmatmul.mubr.msk.bf16.vlgmr.msra.gmra.mrb[0].mxu0 %vm223_vm2, %v1320_v61 }
  0xd9   : > { %970 = vmatpush1.bf16.msra.mxu0 %v961_v4  ;;  %1001 = vmatprep.mubr.bf16.mxu0 %v1510_v1 }
  0xda   : > { %1329 = vmatprep.subr.msk.bf16.mxu0 %vm227_vm1, %v1063_v5 }
  0xdd   : > { %1397 = vmatmul.mubr.msk.bf16.vlgmr.msra.gmra.mrb[0].mxu1 %vm223_vm2, %v1324_v6 }
  0xde   : > { %1401 = vmatpush3.bf16.msra.mxu1 %v1074_v7  ;;  %1402 = vmatprep.mubr.msk.bf16.mxu1 %vm1509_vm0, %v1508_v0  ;;  %v199_v0 = vld [vmem:[%s1689_s3] sm:$0x7] }
  0xdf   : > { %v1172_v18 = vrot.slane %v199_v0, %v1171_v13  ;;  %v1164_v20 = vrot.slane %v199_v0, %v1163_v14  ;;  %v1168_v21 = vrot.slane %v199_v0, %v1167_v16 }
  0xe4   : > { %1326 = vmatmul.mubr.msk.bf16.vlgmr.msra.gmra.mrb[0].mxu0 %vm223_vm2, %v1324_v6 }
  0xe5   : > { %1077 = vmatpush1.bf16.msra.mxu0 %v1068_v9  ;;  %1108 = vmatprep.mubr.bf16.mxu0 %v1510_v1 }
  0xe9   : > { %1403 = vmatmul.mubr.msk.bf16.vlgmr.msra.gmra.mrb[0].mxu1 %vm223_vm2, %v1328_v10 }
  0xf0   : > { %1330 = vmatmul.mubr.msk.bf16.vlgmr.msra.gmra.mrb[0].mxu0 %vm223_vm2, %v1328_v10 }
 0x1bc   : > { %v1151_v15 = vpop.f32.mrb[0].mxu1 }
 0x1bd   : > { %v1404_v17 = vpop.f32.mrb[1].mxu1  ;;  %v1178_v23 = vmul.f32 %v1172_v18, %v1151_v15 }
 0x1be   : > { %v1154_v1 = vpop.f32.mrb[2].mxu1 }
 0x1bf   : > { %v1405_v19 = vpop.f32.mrb[3].mxu1  ;;  %v1181_v30 = vsel %vm1180_vm11, %v1178_v23, 0.0 }
 0x1c3   : > { %v1110_v22 = vpop.f32.mrb[0].mxu0 }
 0x1c4   : > { %v1176_v24 = vmul.f32 %v1164_v20, %v1110_v22  ;;  %v1112_v25 = vpop.f32.mrb[1].mxu0 }
 0x1c5   : > { %v1177_v26 = vmul.f32 %v1168_v21, %v1112_v25  ;;  %v1114_v27 = vpop.f32.mrb[2].mxu0 }
 0x1c6   : > { %v1115_v28 = vpop.f32.mrb[3].mxu0 }
 0x1c7   : > { %v1179_v29 = vadd.f32 %v1177_v26, %v1176_v24 }
 0x1c9   : > { %v1182_v31 = vadd.f32 %v1181_v30, %v1179_v29 }
 0x1cb   : > { %1183 = vadd.xlane.f32.xlu0 %v1182_v31 }
 0x258   : > { %v1184_v32 = vpop.xlane.xlu0 %1183 }
 0x259   : > { %v1185_v33 = vmul.f32 0.00390625, %v1184_v32 }
 0x25b   : > { %v1186_v34 = vsub.f32 %v1110_v22, %v1185_v33  ;;  %v1187_v35 = vsub.f32 %v1112_v25, %v1185_v33  ;;  %v1188_v36 = vsub.f32 %v1151_v15, %v1185_v33 }
 0x25d   : > { %v1189_v37 = vmul.f32 %v1186_v34, %v1186_v34  ;;  %v1190_v38 = vmul.f32 %v1187_v35, %v1187_v35  ;;  %v1191_v39 = vmul.f32 %v1188_v36, %v1188_v36 }
 0x25f   : > { %v1192_v40 = vmul.f32 %v1189_v37, %v1164_v20  ;;  %v1193_v41 = vmul.f32 %v1190_v38, %v1168_v21  ;;  %v1194_v42 = vmul.f32 %v1191_v39, %v1172_v18 }
 0x261   : > { %v1195_v43 = vadd.f32 %v1193_v41, %v1192_v40  ;;  %v1196_v44 = vsel %vm1180_vm11, %v1194_v42, 0.0 }
 0x263   : > { %v1197_v45 = vadd.f32 %v1196_v44, %v1195_v43 }
 0x265   : > { %1198 = vadd.xlane.f32.xlu1 %v1197_v45 }
 0x276   : > { %1214 = vperm.xlu1 %1493, %v200_v46  }
 0x2f2   : > { %v1199_v48 = vpop.xlane.xlu1 %1198 }
 0x2f3   : > { %v1200_v49 = vmul.f32 0.00390625, %v1199_v48 }
 0x2f5   : > { %v1201_v50 = vadd.f32 1e-05, %v1200_v49 }
 0x2f6   : > { %v1215_v54 = vpop.permute.xlu1 %1214 }
 0x2f7   : > { %1498 = vrsqrt.f32 %v1201_v50 }
 0x301   : > { %v1499_v51 = vpop.eup %1498 }
 0x302   : > { %v1203_v52 = vmul.f32 %v1499_v51, %v200_v46 }
 0x304   : > { %1206 = vperm.xlu0 %1492, %v1203_v52  }
 0x308   : > { %1494 = vset.pattern.permute.xlu0 %v1519_v47 }
 0x383   : > { %v1207_v53 = vpop.permute.xlu0 %1206 }
 0x384   : > { %v1209_v55 = vmul.f32 %v1207_v53, %v1186_v34  ;;  %v1210_v56 = vmul.f32 %v1207_v53, %v1187_v35  ;;  %v1211_v57 = vmul.f32 %v1207_v53, %v1188_v36 }
 0x386   : > { %v1217_v58 = vadd.f32 %v1215_v54, %v1209_v55  ;;  %v1218_v59 = vadd.f32 %v1215_v54, %v1210_v56  ;;  %v1219_v60 = vadd.f32 %v1215_v54, %v1211_v57 }
 0x388   : > { %vm1220_vm12 = vcmp.gt.f32.partialorder %v1217_v58, 0.0  ;;  %vm1221_vm13 = vcmp.gt.f32.partialorder %v1218_v59, 0.0  ;;  %vm1222_vm14 = vcmp.gt.f32.partialorder %v1219_v60, 0.0  ;;  %v1223_v61 = vmul.f32 0.01, %v1217_v58 }
 0x389   : > { %v1224_v62 = vmul.f32 0.01, %v1218_v59  ;;  %v1225_v63 = vmul.f32 0.01, %v1219_v60 }
 0x38a   : > { %v1226_v2 = vsel %vm1220_vm12, %v1217_v58, %v1223_v61 }
 0x38b   : > { %v1227_v3 = vsel %vm1221_vm13, %v1218_v59, %v1224_v62  ;;  %v1228_v4 = vsel %vm1222_vm14, %v1219_v60, %v1225_v63  ;;  %1229 = vst [vmem:[%s197_s30] sm:$0xff] %v1226_v2 }
 0x38c   : > { %1230 = vst [vmem:[%s197_s30 + $0x8] sm:$0xff] %v1227_v3  ;;  %1231 = vst.msk [vmem:[%s197_s30 + $0x10] sm:$0xff] %vm1180_vm11, %v1228_v4 }
 0x38d PF: > { %s14_s15 = sadd.s32 1, %s1506_s15  }
 0x38e   : > { %p11_p4 = scmp.ge.s32.totalorder %s14_s15, 4  }
 0x390   :  { %13 = sbr.rel (!%p11_p4) target bundleno = 1 (0x1), region = 74 }

</bundles_post_ra>
